<compile_context>
chip_gen: v6e
topology: v6e:2x2x1
jax: 0.10.0
libtpu: 0.0.40
codegen_flags: <defaults>
</compile_context>

<pallas_src>
import math

import jax
import jax.numpy as jnp
from jax.experimental import pallas as pl
from jax.experimental.pallas import tpu as pltpu


def _subgraph_layer_kernel(x_ref, w_ref, b_ref, out_ref):
    # x_ref : (b_tile*N, C_in)   w_ref : (C_in, H)   b_ref : (1, H) f32
    # out_ref : (b_tile, N, 2H)
    b_tile, n, two_h = out_ref.shape
    h = two_h // 2

    # Linear (+ f32 accumulation on the MXU), bias add and ReLU in f32.
    hid = jnp.dot(x_ref[...], w_ref[...], preferred_element_type=jnp.float32)
    enc = jnp.maximum(hid + b_ref[...], 0.0)              # (b_tile*N, H) f32

    # Per-subgraph max over the node dimension (PyTorch dim=0 per subgraph).
    # Splitting the sublane dim at N (=8 for this module) is layout-free.
    enc3 = enc.reshape(b_tile, n, h)                       # (b_tile, N, H)
    poly = jnp.max(enc3, axis=1, keepdims=True)            # (b_tile, 1, H)

    # Two direct slice stores: [enc | broadcast(poly)] along the feature axis.
    # No concatenate (no lane rotate/select, no full-width f32 temporary).
    out_ref[:, :, :h] = enc3.astype(out_ref.dtype)
    out_ref[:, :, h:] = jnp.broadcast_to(poly, enc3.shape).astype(out_ref.dtype)


def subgraph_net_layer(x, w, b, *, rows_per_block=4096,
                       compute_dtype=jnp.bfloat16, out_dtype=None):
    """SubgraphNet_Layer forward.

    x: (N, C_in) single subgraph or (B, N, C_in) batch of subgraphs.
    w: (C_in, H) pre-transposed Linear weight, b: (H,) bias.
    Returns (N, 2H) or (B, N, 2H) in out_dtype (default: x.dtype).
    """
    squeeze = x.ndim == 2
    if squeeze:
        x = x[None]
    bsz, n, c_in = x.shape
    h = w.shape[1]
    if out_dtype is None:
        out_dtype = x.dtype

    # bf16 inputs halve HBM read traffic; accumulation stays f32 in-kernel.
    # Free if the caller already supplies compute_dtype activations.
    xc = x.astype(compute_dtype)
    wc = w.astype(compute_dtype)
    b2 = b.reshape(1, h).astype(jnp.float32)

    itemsize_in = jnp.dtype(compute_dtype).itemsize
    itemsize_out = jnp.dtype(out_dtype).itemsize

    # ---- Balanced tiling over whole subgraphs (no jnp.pad / no HBM copy) ----
    max_b_tile = max(1, rows_per_block // n)
    num_blocks = pl.cdiv(bsz, max_b_tile)
    if num_blocks < 2 and bsz >= 2:
        num_blocks = 2          # keep both v7x TensorCores busy ("parallel")
    b_tile = pl.cdiv(bsz, num_blocks)

    # (sublane,128) rule: x block's second-to-last dim (b_tile*n) must be a
    # multiple of the dtype's sublane tile (8 for f32, 16 for bf16) unless it
    # is the full extent.
    sublane = 8 * max(1, 4 // itemsize_in)
    align = sublane // math.gcd(n, sublane)
    b_tile = ((b_tile + align - 1) // align) * align
    if b_tile >= bsz:
        b_tile, num_blocks = bsz, 1          # full extent -> always legal
    else:
        num_blocks = pl.cdiv(bsz, b_tile)

    x2 = xc.reshape(bsz * n, c_in)           # row-major, free

    # ---- VMEM budget: last dims (C_in=32, 2H=32) lane-pad to 128 on-chip ----
    blk_rows = b_tile * n
    vmem_est = (2 * blk_rows * 128 * itemsize_in      # x, double-buffered
                + 2 * blk_rows * 128 * itemsize_out   # out, double-buffered
                + 3 * blk_rows * 128 * 4              # f32 hid/enc/poly temps
                + (1 << 20))                          # W, b, slack
    vmem_limit = int(min(max(vmem_est, 16 << 20), 48 << 20))   # <=48MiB: v7x-safe

    cost = pl.CostEstimate(
        flops=2 * bsz * n * c_in * h + 3 * bsz * n * h,
        transcendentals=0,
        bytes_accessed=(bsz * n * c_in * itemsize_in
                        + c_in * h * itemsize_in + h * 4
                        + bsz * n * 2 * h * itemsize_out),
    )

    out = pl.pallas_call(
        _subgraph_layer_kernel,
        out_shape=jax.ShapeDtypeStruct((bsz, n, 2 * h), out_dtype),
        grid_spec=pltpu.PrefetchScalarGridSpec(
            num_scalar_prefetch=0,
            grid=(num_blocks,),
            in_specs=[
                pl.BlockSpec((b_tile * n, c_in), lambda i: (i, 0)),   # x rows
                pl.BlockSpec((c_in, h), lambda i: (0, 0)),            # W resident
                pl.BlockSpec((1, h), lambda i: (0, 0)),               # b resident
            ],
            out_specs=pl.BlockSpec((b_tile, n, 2 * h), lambda i: (i, 0, 0)),
        ),
        compiler_params=pltpu.CompilerParams(
            dimension_semantics=("parallel",),   # 2 TCs on v7x; no-op elsewhere
            vmem_limit_bytes=vmem_limit,
        ),
        cost_estimate=cost,
    )(x2, wc, b2)

    return out[0] if squeeze else out


def _reference(x, w, b):
    hidden = x @ w + b
    enc = jnp.maximum(hidden, 0.0)
    poly = jnp.max(enc, axis=0, keepdims=True)
    return jnp.concatenate([enc, jnp.broadcast_to(poly, enc.shape)], axis=1)


if __name__ == "__main__":
    input_channels = 32
    hidden_channels = 16
    n_nodes = 8     # rows ("vectors") per subgraph
    batch = 50      # number of subgraphs; deliberately not a tile multiple

    key = jax.random.PRNGKey(0)
    kx, kw, kb = jax.random.split(key, 3)

    # PyTorch nn.Linear-style uniform init bound.
    bound = 1.0 / jnp.sqrt(jnp.float32(input_channels))
    w = jax.random.uniform(kw, (input_channels, hidden_channels),
                           jnp.float32, -bound, bound)
    b = jax.random.uniform(kb, (hidden_channels,), jnp.float32, -bound, bound)
    xb = jax.random.normal(kx, (batch, n_nodes, input_channels), jnp.float32)

    ref_b = jax.vmap(lambda xi: _reference(xi, w, b))(xb)

    # 1) f32 path: exact module numerics; multi-block grid (4 blocks of 13
    #    subgraphs, partial final block, no padding copy).
    out_f32 = jax.block_until_ready(
        subgraph_net_layer(xb, w, b, rows_per_block=128,
                           compute_dtype=jnp.float32))
    assert out_f32.shape == (batch, n_nodes, 2 * hidden_channels)
    assert jnp.allclose(out_f32, ref_b, atol=1e-5, rtol=1e-5)

    # 2) bf16 I/O path (recommended production config): caller supplies bf16
    #    activations so the wrapper cast is a no-op; f32 accumulation inside.
    xb_bf16 = xb.astype(jnp.bfloat16)
    out_bf = jax.block_until_ready(
        subgraph_net_layer(xb_bf16, w, b, rows_per_block=128))
    assert out_bf.shape == (batch, n_nodes, 2 * hidden_channels)
    assert out_bf.dtype == jnp.bfloat16
    assert jnp.allclose(out_bf.astype(jnp.float32), ref_b, atol=3e-2, rtol=3e-2)

    # 3) Single-subgraph path: exactly the original module's forward signature.
    x1 = xb[0]
    out_1 = jax.block_until_ready(
        subgraph_net_layer(x1, w, b, compute_dtype=jnp.float32))
    assert out_1.shape == (n_nodes, 2 * hidden_channels)
    assert jnp.allclose(out_1, _reference(x1, w, b), atol=1e-5, rtol=1e-5)

    print("KERNEL_OK")
</pallas_src>

<mosaic_0001>
module attributes {stable_mosaic.version = 11 : i64} {
  func.func @_subgraph_layer_kernel(%arg0: i32, %arg1: memref<104x32xf32, #tpu.memory_space<vmem>>, %arg2: memref<32x16xf32, #tpu.memory_space<vmem>>, %arg3: memref<1x16xf32, #tpu.memory_space<vmem>>, %arg4: memref<13x8x32xf32, #tpu.memory_space<vmem>>) attributes {dimension_semantics = [#tpu.dimension_semantics<parallel>], iteration_bounds = array<i64: 4>, scalar_prefetch = 0 : i64, scratch_operands = 0 : i64, tpu.core_type = #tpu.core_type<tc>, window_params = [{transform_indices = @transform_0, window_bounds = array<i64: 104, 32>}, {pipeline_mode = #tpu.pipeline_mode<synchronous>, transform_indices = @transform_1, window_bounds = array<i64: 32, 16>}, {pipeline_mode = #tpu.pipeline_mode<synchronous>, transform_indices = @transform_2, window_bounds = array<i64: 1, 16>}, {transform_indices = @transform_3, window_bounds = array<i64: 13, 8, 32>}]} {
    %c0 = arith.constant 0 : index
    %c0_0 = arith.constant 0 : index
    %0 = vector.load %arg1[%c0, %c0_0] : memref<104x32xf32, #tpu.memory_space<vmem>>, vector<104x32xf32>
    %c0_1 = arith.constant 0 : index
    %c0_2 = arith.constant 0 : index
    %1 = vector.load %arg2[%c0_1, %c0_2] : memref<32x16xf32, #tpu.memory_space<vmem>>, vector<32x16xf32>
    %cst = arith.constant dense<0.000000e+00> : vector<104x16xf32>
    %2 = tpu.matmul %0, %1, %cst {dimension_numbers = #tpu.dot_dimension_numbers<[1], [0], [0], [1], [0, 0, 1, 1], [], []>} : vector<104x32xf32>, vector<32x16xf32>, vector<104x16xf32> -> vector<104x16xf32>
    %c0_3 = arith.constant 0 : index
    %c0_4 = arith.constant 0 : index
    %3 = vector.load %arg3[%c0_3, %c0_4] : memref<1x16xf32, #tpu.memory_space<vmem>>, vector<1x16xf32>
    %4 = vector.broadcast %3 : vector<1x16xf32> to vector<104x16xf32>
    %5 = arith.addf %2, %4 : vector<104x16xf32>
    %cst_5 = arith.constant 0.000000e+00 : f32
    %6 = vector.broadcast %cst_5 : f32 to vector<104x16xf32>
    %7 = arith.maximumf %5, %6 : vector<104x16xf32>
    %8 = vector.shape_cast %7 : vector<104x16xf32> to vector<13x8x16xf32>
    %cst_6 = arith.constant dense<0xFF800000> : vector<13x16xf32>
    %9 = vector.multi_reduction <maximumf>, %8, %cst_6 [1] : vector<13x8x16xf32> to vector<13x16xf32>
    %10 = vector.shape_cast %9 : vector<13x16xf32> to vector<13x1x16xf32>
    %c0_7 = arith.constant 0 : index
    %c0_8 = arith.constant 0 : index
    %c0_9 = arith.constant 0 : index
    %11 = vector.load %arg4[%c0_7, %c0_8, %c0_9] : memref<13x8x32xf32, #tpu.memory_space<vmem>>, vector<13x8x16xf32>
    tpu.vector_store %arg4[%c0_7, %c0_8, %c0_9], %8 {strides = array<i32>} : memref<13x8x32xf32, #tpu.memory_space<vmem>>, vector<13x8x16xf32>,
    %12 = vector.shape_cast %10 : vector<13x1x16xf32> to vector<13x1x16xf32>
    %13 = vector.broadcast %12 : vector<13x1x16xf32> to vector<13x8x16xf32>
    %c0_10 = arith.constant 0 : index
    %c0_11 = arith.constant 0 : index
    %c16 = arith.constant 16 : index
    %14 = vector.load %arg4[%c0_10, %c0_11, %c16] : memref<13x8x32xf32, #tpu.memory_space<vmem>>, vector<13x8x16xf32>
    tpu.vector_store %arg4[%c0_10, %c0_11, %c16], %13 {strides = array<i32>} : memref<13x8x32xf32, #tpu.memory_space<vmem>>, vector<13x8x16xf32>,
    return
  }
  func.func @transform_0(%arg0: i32) -> (i32, i32) {
    %c0_i32 = arith.constant 0 : i32
    %c0_i32_0 = arith.constant 0 : i32
    return %arg0, %c0_i32 : i32, i32
  }
  func.func @transform_1(%arg0: i32) -> (i32, i32) {
    %c0_i32 = arith.constant 0 : i32
    %c0_i32_0 = arith.constant 0 : i32
    %c0_i32_1 = arith.constant 0 : i32
    return %c0_i32, %c0_i32_0 : i32, i32
  }
  func.func @transform_2(%arg0: i32) -> (i32, i32) {
    %c0_i32 = arith.constant 0 : i32
    %c0_i32_0 = arith.constant 0 : i32
    %c0_i32_1 = arith.constant 0 : i32
    return %c0_i32, %c0_i32_0 : i32, i32
  }
  func.func @transform_3(%arg0: i32) -> (i32, i32, i32) {
    %c0_i32 = arith.constant 0 : i32
    %c0_i32_0 = arith.constant 0 : i32
    %c0_i32_1 = arith.constant 0 : i32
    return %arg0, %c0_i32, %c0_i32_0 : i32, i32, i32
  }
}

</mosaic_0001>

<bundles_post_ra>
// kernel: tpu_custom_call.1
= control target key start
LH: loop header
LB: loop body
LE: loop exit
PB: predicated region body
PF: predicated region fallthrough
CT: control target
= control target key end

     0   :  { %s1148_s12 = smov 0   ;;  %s1150_s13 = smov 0   ;;  %s1426_s0 = inlined_call_operand.vmem [shape: f32[400,32], index: 0, kind: input, shape index: {}]   ;;  %s1427_s1 = inlined_call_operand.vmem [shape: f32[32,16], index: 1, kind: input, shape index: {}]   ;;  %s1428_s2 = inlined_call_operand.vmem [shape: f32[1,16], index: 2, kind: input, shape index: {}]   ;;  %s1429_s3 = inlined_call_operand.vmem [shape: f32[50,8,32], index: 3, kind: output, shape index: {}]  }
   0x1   :  { %s1152_s14 = smov 0  }
   0x2 LB: > { %s1161_s15 = sadd.s32 4294967295, %s1091_s14   ;;  %s1163_s16 = sadd.s32 1, %s1091_s14   ;;  %s1091_s14 = sphi %s1152_s14, %s1436_s14   ;;  %s1087_s13 = sphi %s1150_s13, %s1435_s13   ;;  %s1083_s12 = sphi %s1148_s12, %s1434_s12  }
   0x3   : > { %s85_s17 = ssub.s32 %s1091_s14, %s1163_s16  ;;  %s88_s18 = sadd.s32 1, %s1087_s13 }
   0x4   : > { %p86_p0 = scmp.eq.s32.totalorder %s85_s17, 0  ;;  %p98_p1 = scmp.ne.s32.totalorder %s1087_s13, %s1083_s12 }
   0x5   : > { %p99_p2 = scmp.eq.s32.totalorder %s1161_s15, 3  ;;  %p839_p3 = scmp.ge.s32.totalorder %s1091_s14, 1 }
   0x6   : > { %s1171_s19 = scalar_select %p86_p0, %s1087_s13, %s88_s18  }
   0x7   : > { %p1173_p4 = por %p99_p2, %p98_p1  ;;  %p146_p5 = scmp.lt.s32.totalorder %s1091_s14, 5 }
   0x9   : > { %p147_p6 = pnand %p839_p3, %p146_p5 }
   0xa   : > { %s1181_s23 = smul.u32 (!%p147_p6), 13, %s1161_s15  ;;  %s170_s8 = sand.u32 (!%p147_p6), 1, %s1083_s12  }
   0xb   : > { %150 = sbr.rel (%p147_p6) target bundleno = 433 (0x1b1), region = 32  ;;  %s1127_s14 = smov (!%p147_p6), 16  }
   0xc   : > { %p178_p7 = scmp.lt.s32.totalorder (!%p147_p6), %s1181_s23, 49  ;;  %s940_s9 = smul.u32 (!%p147_p6), 104, %s170_s8 }
   0xe   : > { %s1247_s12 = scalar_lea.vmem (!%p147_p6), [#allocation2], %s940_s9  }
  0x10   : > { %v208_v0 = vld [vmem:[%s1427_s1 + $0x18] sm:$0xff]  ;;  %v1125_v1 = vmov 0.0   ;;  %v207_v2 = vld [vmem:[%s1427_s1 + $0x10] sm:$0xff]  ;;  %v206_v3 = vld [vmem:[%s1427_s1 + $0x8] sm:$0xff]  ;;  %s179_s28 = scalar_select %p178_p7, %s1181_s23, 49  ;;  %vm216_vm0 = vcmask 261120  }
  0x11   : > { %885 = vmatprep.subr.mxu0 %v1125_v1  ;;  %932 = vmatprep.subr.mxu1 %v1125_v1  ;;  %v205_v4 = vld [vmem:[%s1427_s1] sm:$0xff]  ;;  %vm1126_vm1 = vmmov 0   ;;  %vm399_vm2 = vcmask 130048   ;;  %vm556_vm3 = vcmask 261248   ;;  %s578_s17 = ssub.s32 (%p1173_p4), 50, %s1181_s23  ;;  %s867_s18 = smul.u32 (%p1173_p4), 104, %s1161_s15 }
  0x12   : > { %886 = vmatpush3.msra.mxu0 %v208_v0  ;;  %936 = vmatpush3.msra.mxu1 %v208_v0  ;;  %s840_s4 = sshll.u32 %s179_s28, 3  ;;  %v1242_v18 = vld [vmem:[%s1428_s2] ss:$0 sm:$0xff]  ;;  %p579_p8 = scmp.lt.s32.totalorder (%p1173_p4), %s578_s17, 13 }
  0x13   : > { %887 = vmatprep.subr.mxu0 %v1125_v1  ;;  %933 = vmatprep.subr.mxu1 %v1125_v1  ;;  %s1197_s7 = scalar_lea.vmem %s1426_s0, %s840_s4  ;;  %s1344_s24 = scalar_lea.vmem (%p1173_p4), %s1429_s3, %s867_s18  }
  0x14   : > { %888 = vmatpush3.msra.mxu0 %v207_v2  ;;  %937 = vmatpush3.msra.mxu1 %v207_v2  ;;  %v192_v5 = vld [vmem:[%s1197_s7] sm:$0xff]  ;;  %v199_v6 = vld [vmem:[%s1197_s7 + $0x38] sm:$0xff]  ;;  %v193_v7 = vld [vmem:[%s1197_s7 + $0x8] sm:$0xff] }
  0x15   : > { %889 = vmatprep.subr.mxu0 %v1125_v1  ;;  %934 = vmatprep.subr.mxu1 %v1125_v1  ;;  %v200_v8 = vld [vmem:[%s1197_s7 + $0x40] sm:$0xff]  ;;  %v194_v9 = vld [vmem:[%s1197_s7 + $0x10] sm:$0xff]  ;;  %v201_v10 = vld [vmem:[%s1197_s7 + $0x48] sm:$0xff] }
  0x16   : > { %890 = vmatpush3.msra.mxu0 %v206_v3  ;;  %938 = vmatpush3.msra.mxu1 %v206_v3  ;;  %v195_v11 = vld [vmem:[%s1197_s7 + $0x18] sm:$0xff]  ;;  %v202_v12 = vld [vmem:[%s1197_s7 + $0x50] sm:$0xff]  ;;  %v196_v13 = vld [vmem:[%s1197_s7 + $0x20] sm:$0xff] }
  0x17   : > { %891 = vmatprep.subr.mxu0 %v1125_v1  ;;  %935 = vmatprep.subr.mxu1 %v1125_v1  ;;  %v203_v14 = vld [vmem:[%s1197_s7 + $0x58] sm:$0xff]  ;;  %v197_v15 = vld [vmem:[%s1197_s7 + $0x28] sm:$0xff]  ;;  %v204_v16 = vld [vmem:[%s1197_s7 + $0x60] sm:$0xff] }
  0x18   : > { %892 = vmatpush3.msra.mxu0 %v205_v4  ;;  %939 = vmatpush3.msra.mxu1 %v205_v4  ;;  %v198_v17 = vld [vmem:[%s1197_s7 + $0x30] sm:$0xff] }
  0x19   : > { %893 = vmatprep.mubr.msk.f32.mxu0 %vm1126_vm1, %v1125_v1  ;;  %914 = vmatprep.mubr.msk.f32.mxu1 %vm1126_vm1, %v1125_v1 }
  0x1a   : > { %894 = vmatmul.mubr.msk.f32.vlgmr.msra.gmra.mxu0 %vm216_vm0, %v192_v5  ;;  %915 = vmatmul.mubr.msk.f32.vlgmr.msra.gmra.mxu1 %vm216_vm0, %v199_v6 }
  0x1b   : > { %896 = vmatprep.mubr.msk.f32.mxu0 %vm1126_vm1, %v1125_v1  ;;  %917 = vmatprep.mubr.msk.f32.mxu1 %vm1126_vm1, %v1125_v1 }
  0x1e   : > { %897 = vmatmul.mubr.msk.f32.gmra.mxu0 %vm216_vm0, %v193_v7  ;;  %918 = vmatmul.mubr.msk.f32.gmra.mxu1 %vm216_vm0, %v200_v8 }
  0x1f   : > { %899 = vmatprep.mubr.msk.f32.mxu0 %vm1126_vm1, %v1125_v1  ;;  %920 = vmatprep.mubr.msk.f32.mxu1 %vm1126_vm1, %v1125_v1 }
  0x22   : > { %900 = vmatmul.mubr.msk.f32.gmra.mxu0 %vm216_vm0, %v194_v9  ;;  %921 = vmatmul.mubr.msk.f32.gmra.mxu1 %vm216_vm0, %v201_v10 }
  0x23   : > { %902 = vmatprep.mubr.msk.f32.mxu0 %vm1126_vm1, %v1125_v1  ;;  %923 = vmatprep.mubr.msk.f32.mxu1 %vm1126_vm1, %v1125_v1 }
  0x26   : > { %903 = vmatmul.mubr.msk.f32.gmra.mxu0 %vm216_vm0, %v195_v11  ;;  %924 = vmatmul.mubr.msk.f32.gmra.mxu1 %vm216_vm0, %v202_v12 }
  0x27   : > { %905 = vmatprep.mubr.msk.f32.mxu0 %vm1126_vm1, %v1125_v1  ;;  %926 = vmatprep.mubr.msk.f32.mxu1 %vm1126_vm1, %v1125_v1 }
  0x2a   : > { %906 = vmatmul.mubr.msk.f32.gmra.mxu0 %vm216_vm0, %v196_v13  ;;  %927 = vmatmul.mubr.msk.f32.gmra.mxu1 %vm216_vm0, %v203_v14 }
  0x2b   : > { %908 = vmatprep.mubr.msk.f32.mxu0 %vm1126_vm1, %v1125_v1  ;;  %929 = vmatprep.mubr.msk.f32.mxu1 %vm1126_vm1, %v1125_v1 }
  0x2e   : > { %909 = vmatmul.mubr.msk.f32.gmra.mxu0 %vm216_vm0, %v197_v15  ;;  %930 = vmatmul.mubr.msk.f32.gmra.mxu1 %vm216_vm0, %v204_v16 }
  0x2f   : > { %911 = vmatprep.mubr.msk.f32.mxu0 %vm1126_vm1, %v1125_v1 }
  0x32   : > { %912 = vmatmul.mubr.msk.f32.gmra.mxu0 %vm216_vm0, %v198_v17 }
  0xda   : > { %v322_v19 = vpop.f32.mrf.mxu0  ;;  %v357_v20 = vpop.f32.mrf.mxu1 }
  0xdb   : > { %v323_v21 = vadd.f32 %v1242_v18, %v322_v19  ;;  %v358_v22 = vadd.f32 %v1242_v18, %v357_v20 }
  0xdc   : > { %v895_v23 = vpop.f32.mrf.mxu0  ;;  %v916_v24 = vpop.f32.mrf.mxu1 }
  0xdd   : > { %v386_v25 = vmax.f32 %v323_v21, 0.0  ;;  %v393_v26 = vmax.f32 %v358_v22, 0.0 }
  0xde   : > { %v327_v27 = vpop.f32.mrf.mxu0  ;;  %v362_v28 = vpop.f32.mrf.mxu1 }
  0xdf   : > { %v400_v29 = vsel %vm399_vm2, %v386_v25, -inf  ;;  %491 = vst.msk [vmem:[%s1247_s12] sm:$0xff] %vm399_vm2, %v386_v25  ;;  %v449_v30 = vsel %vm399_vm2, %v393_v26, -inf  ;;  %498 = vst.msk [vmem:[%s1247_s12 + $0x38] sm:$0xff] %vm399_vm2, %v393_v26  ;;  %v328_v31 = vadd.f32 %v1242_v18, %v327_v27  ;;  %v363_v32 = vadd.f32 %v1242_v18, %v362_v28 }
  0xe0   : > { %v401_v33 = vrot.slane %v400_v29, 4  ;;  %v450_v34 = vrot.slane %v449_v30, 4  ;;  %v898_v35 = vpop.f32.mrf.mxu0  ;;  %v919_v36 = vpop.f32.mrf.mxu1 }
  0xe1   : > { %v387_v37 = vmax.f32 %v328_v31, 0.0  ;;  %v394_v38 = vmax.f32 %v363_v32, 0.0 }
  0xe2   : > { %v402_v39 = vmax.f32 %v400_v29, %v401_v33  ;;  %v451_v40 = vmax.f32 %v449_v30, %v450_v34  ;;  %v332_v41 = vpop.f32.mrf.mxu0  ;;  %v367_v42 = vpop.f32.mrf.mxu1 }
  0xe3   : > { %v407_v43 = vsel %vm399_vm2, %v387_v37, -inf  ;;  %492 = vst.msk [vmem:[%s1247_s12 + $0x8] sm:$0xff] %vm399_vm2, %v387_v37  ;;  %v456_v44 = vsel %vm399_vm2, %v394_v38, -inf  ;;  %499 = vst.msk [vmem:[%s1247_s12 + $0x40] sm:$0xff] %vm399_vm2, %v394_v38  ;;  %v333_v45 = vadd.f32 %v1242_v18, %v332_v41  ;;  %v368_v46 = vadd.f32 %v1242_v18, %v367_v42 }
  0xe4   : > { %v408_v47 = vrot.slane %v407_v43, 4  ;;  %v457_v48 = vrot.slane %v456_v44, 4  ;;  %v901_v49 = vpop.f32.mrf.mxu0  ;;  %v922_v50 = vpop.f32.mrf.mxu1  ;;  %v452_v51 = vrot.slane %v451_v40, 2  ;;  %v403_v52 = vrot.slane %v402_v39, 2 }
  0xe5   : > { %v388_v53 = vmax.f32 %v333_v45, 0.0  ;;  %v395_v54 = vmax.f32 %v368_v46, 0.0 }
  0xe6   : > { %v409_v55 = vmax.f32 %v407_v43, %v408_v47  ;;  %v458_v56 = vmax.f32 %v456_v44, %v457_v48  ;;  %v337_v57 = vpop.f32.mrf.mxu0  ;;  %v372_v58 = vpop.f32.mrf.mxu1  ;;  %v453_v59 = vmax.f32 %v451_v40, %v452_v51  ;;  %v404_v60 = vmax.f32 %v402_v39, %v403_v52 }
  0xe7   : > { %v414_v61 = vsel %vm399_vm2, %v388_v53, -inf  ;;  %493 = vst.msk [vmem:[%s1247_s12 + $0x10] sm:$0xff] %vm399_vm2, %v388_v53  ;;  %v463_v62 = vsel %vm399_vm2, %v395_v54, -inf  ;;  %500 = vst.msk [vmem:[%s1247_s12 + $0x48] sm:$0xff] %vm399_vm2, %v395_v54  ;;  %v338_v63 = vadd.f32 %v1242_v18, %v337_v57  ;;  %v373_v0 = vadd.f32 %v1242_v18, %v372_v58 }
  0xe8   : > { %v410_v1 = vrot.slane %v409_v55, 2  ;;  %v459_v2 = vrot.slane %v458_v56, 2  ;;  %v415_v3 = vrot.slane %v414_v61, 4  ;;  %v464_v4 = vrot.slane %v463_v62, 4  ;;  %v904_v5 = vpop.f32.mrf.mxu0  ;;  %v925_v6 = vpop.f32.mrf.mxu1 }
  0xe9   : > { %v389_v7 = vmax.f32 %v338_v63, 0.0  ;;  %v396_v8 = vmax.f32 %v373_v0, 0.0  ;;  %v454_v9 = vrot.slane %v453_v59, 1  ;;  %v405_v10 = vrot.slane %v404_v60, 1 }
  0xea   : > { %v416_v11 = vmax.f32 %v414_v61, %v415_v3  ;;  %v465_v12 = vmax.f32 %v463_v62, %v464_v4  ;;  %v342_v13 = vpop.f32.mrf.mxu0  ;;  %v377_v14 = vpop.f32.mrf.mxu1  ;;  %v411_v15 = vmax.f32 %v409_v55, %v410_v1  ;;  %v460_v16 = vmax.f32 %v458_v56, %v459_v2 }
  0xeb   : > { %v421_v17 = vsel %vm399_vm2, %v389_v7, -inf  ;;  %494 = vst.msk [vmem:[%s1247_s12 + $0x18] sm:$0xff] %vm399_vm2, %v389_v7  ;;  %v470_v19 = vsel %vm399_vm2, %v396_v8, -inf  ;;  %501 = vst.msk [vmem:[%s1247_s12 + $0x50] sm:$0xff] %vm399_vm2, %v396_v8  ;;  %v343_v20 = vadd.f32 %v1242_v18, %v342_v13  ;;  %v455_v21 = vmax.f32 %v453_v59, %v454_v9 }
  0xec   : > { %v417_v22 = vrot.slane %v416_v11, 2  ;;  %v466_v23 = vrot.slane %v465_v12, 2  ;;  %v422_v24 = vrot.slane %v421_v17, 4  ;;  %v471_v25 = vrot.slane %v470_v19, 4  ;;  %v907_v26 = vpop.f32.mrf.mxu0  ;;  %v928_v27 = vpop.f32.mrf.mxu1 }
  0xed   : > { %v390_v28 = vmax.f32 %v343_v20, 0.0  ;;  %531 = vrot.lane.b32.xlu1 %v455_v21, %s1127_s14  ;;  %v378_v29 = vadd.f32 %v1242_v18, %v377_v14  ;;  %v406_v30 = vmax.f32 %v404_v60, %v405_v10  ;;  %v412_v31 = vrot.slane %v411_v15, 1 }
  0xee   : > { %v423_v32 = vmax.f32 %v421_v17, %v422_v24  ;;  %v472_v33 = vmax.f32 %v470_v19, %v471_v25  ;;  %v347_v34 = vpop.f32.mrf.mxu0  ;;  %v382_v35 = vpop.f32.mrf.mxu1  ;;  %v461_v36 = vrot.slane %v460_v16, 1  ;;  %v418_v37 = vmax.f32 %v416_v11, %v417_v22 }
  0xef   : > { %v428_v38 = vsel %vm399_vm2, %v390_v28, -inf  ;;  %495 = vst.msk [vmem:[%s1247_s12 + $0x20] sm:$0xff] %vm399_vm2, %v390_v28  ;;  %v397_v39 = vmax.f32 %v378_v29, 0.0  ;;  %517 = vrot.lane.b32.xlu0 %v406_v30, %s1127_s14  ;;  %v348_v40 = vadd.f32 %v1242_v18, %v347_v34  ;;  %v383_v41 = vadd.f32 %v1242_v18, %v382_v35 }
  0xf0   : > { %v424_v42 = vrot.slane %v423_v32, 2  ;;  %v473_v43 = vrot.slane %v472_v33, 2  ;;  %v429_v44 = vrot.slane %v428_v38, 4  ;;  %v413_v45 = vmax.f32 %v411_v15, %v412_v31  ;;  %v910_v46 = vpop.f32.mrf.mxu0  ;;  %v931_v47 = vpop.f32.mrf.mxu1 }
  0xf1   : > { %v477_v48 = vsel %vm399_vm2, %v397_v39, -inf  ;;  %502 = vst.msk [vmem:[%s1247_s12 + $0x58] sm:$0xff] %vm399_vm2, %v397_v39  ;;  %v391_v49 = vmax.f32 %v348_v40, 0.0  ;;  %v398_v50 = vmax.f32 %v383_v41, 0.0  ;;  %v462_v51 = vmax.f32 %v460_v16, %v461_v36 }
  0xf2   : > { %v430_v52 = vmax.f32 %v428_v38, %v429_v44  ;;  %v478_v53 = vrot.slane %v477_v48, 4  ;;  %v352_v54 = vpop.f32.mrf.mxu0  ;;  %v419_v55 = vrot.slane %v418_v37, 1  ;;  %v474_v56 = vmax.f32 %v472_v33, %v473_v43 }
  0xf3   : > { %v435_v57 = vsel %vm399_vm2, %v391_v49, -inf  ;;  %496 = vst.msk [vmem:[%s1247_s12 + $0x28] sm:$0xff] %vm399_vm2, %v391_v49  ;;  %v484_v58 = vsel %vm399_vm2, %v398_v50, -inf  ;;  %503 = vst.msk [vmem:[%s1247_s12 + $0x60] sm:$0xff] %vm399_vm2, %v398_v50  ;;  %519 = vrot.lane.b32.xlu0 %v413_v45, %s1127_s14  ;;  %v353_v59 = vadd.f32 %v1242_v18, %v352_v54  ;;  %v467_v60 = vmax.f32 %v465_v12, %v466_v23 }
  0xf4   : > { %v431_v61 = vrot.slane %v430_v52, 2  ;;  %v479_v62 = vmax.f32 %v477_v48, %v478_v53  ;;  %v436_v63 = vrot.slane %v435_v57, 4  ;;  %v485_v0 = vrot.slane %v484_v58, 4  ;;  %v913_v1 = vpop.f32.mrf.mxu0 }
  0xf5   : > { %v392_v2 = vmax.f32 %v353_v59, 0.0  ;;  %v420_v3 = vmax.f32 %v418_v37, %v419_v55  ;;  %v475_v4 = vrot.slane %v474_v56, 1  ;;  %v468_v5 = vrot.slane %v467_v60, 1 }
  0xf6   : > { %v437_v6 = vmax.f32 %v435_v57, %v436_v63  ;;  %v486_v7 = vmax.f32 %v484_v58, %v485_v0  ;;  %v425_v8 = vmax.f32 %v423_v32, %v424_v42  ;;  %v432_v10 = vmax.f32 %v430_v52, %v431_v61 }
  0xf7   : > { %v442_v9 = vsel %vm399_vm2, %v392_v2, -inf  ;;  %497 = vst.msk [vmem:[%s1247_s12 + $0x30] sm:$0xff] %vm399_vm2, %v392_v2  ;;  %533 = vrot.lane.b32.xlu0 %v462_v51, %s1127_s14  ;;  %521 = vrot.lane.b32.xlu1 %v420_v3, %s1127_s14  ;;  %v476_v18 = vmax.f32 %v474_v56, %v475_v4  ;;  %v480_v13 = vrot.slane %v479_v62, 2  ;;  %v469_v14 = vmax.f32 %v467_v60, %v468_v5 }
  0xf8   : > { %v438_v11 = vrot.slane %v437_v6, 2  ;;  %v443_v12 = vrot.slane %v442_v9, 4  ;;  %v426_v15 = vrot.slane %v425_v8, 1  ;;  %v433_v16 = vrot.slane %v432_v10, 1 }
  0xf9   : > { %v487_v17 = vrot.slane %v486_v7, 2  ;;  %v481_v25 = vmax.f32 %v479_v62, %v480_v13 }
  0xfa   : > { %v444_v19 = vmax.f32 %v442_v9, %v443_v12  ;;  %v439_v20 = vmax.f32 %v437_v6, %v438_v11  ;;  %v434_v21 = vmax.f32 %v432_v10, %v433_v16  ;;  %v427_v24 = vmax.f32 %v425_v8, %v426_v15 }
  0xfb   : > { %537 = vrot.lane.b32.xlu0 %v476_v18, %s1127_s14  ;;  %535 = vrot.lane.b32.xlu1 %v469_v14, %s1127_s14  ;;  %v488_v27 = vmax.f32 %v486_v7, %v487_v17  ;;  %v482_v30 = vrot.slane %v481_v25, 1 }
  0xfc   : > { %v445_v22 = vrot.slane %v444_v19, 2  ;;  %v440_v23 = vrot.slane %v439_v20, 1 }
  0xfd   : > { %v489_v32 = vrot.slane %v488_v27, 1  ;;  %v483_v33 = vmax.f32 %v481_v25, %v482_v30 }
  0xfe   : > { %v446_v26 = vmax.f32 %v444_v19, %v445_v22  ;;  %v441_v28 = vmax.f32 %v439_v20, %v440_v23 }
  0xff   : > { %523 = vrot.lane.b32.xlu1 %v427_v24, %s1127_s14  ;;  %525 = vrot.lane.b32.xlu0 %v434_v21, %s1127_s14  ;;  %v490_v34 = vmax.f32 %v488_v27, %v489_v32 }
 0x100   : > { %v447_v29 = vrot.slane %v446_v26, 1 }
 0x102   : > { %v448_v31 = vmax.f32 %v446_v26, %v447_v29 }
 0x103   : > { %527 = vrot.lane.b32.xlu1 %v441_v28, %s1127_s14 }
 0x104   : > { %529 = vrot.lane.b32.xlu0 %v448_v31, %s1127_s14 }
 0x107   : > { %539 = vrot.lane.b32.xlu1 %v483_v33, %s1127_s14 }
 0x108   : > { %541 = vrot.lane.b32.xlu0 %v490_v34, %s1127_s14 }
 0x15f   : > { %v532_v35 = vpop.permute.xlu1 %531 }
 0x160   : > { %564 = vst.msk [vmem:[%s1247_s12 + $0x38] sm:$0xff] %vm556_vm3, %v532_v35 }
 0x161   : > { %v518_v36 = vpop.permute.xlu0 %517 }
 0x162   : > { %557 = vst.msk [vmem:[%s1247_s12] sm:$0xff] %vm556_vm3, %v518_v36 }
 0x165   : > { %v520_v37 = vpop.permute.xlu0 %519 }
 0x166   : > { %558 = vst.msk [vmem:[%s1247_s12 + $0x8] sm:$0xff] %vm556_vm3, %v520_v37 }
 0x169   : > { %v534_v38 = vpop.permute.xlu0 %533  ;;  %v522_v39 = vpop.permute.xlu1 %521 }
 0x16a   : > { %565 = vst.msk [vmem:[%s1247_s12 + $0x40] sm:$0xff] %vm556_vm3, %v534_v38  ;;  %559 = vst.msk [vmem:[%s1247_s12 + $0x10] sm:$0xff] %vm556_vm3, %v522_v39 }
 0x16d   : > { %v538_v40 = vpop.permute.xlu0 %537  ;;  %v536_v41 = vpop.permute.xlu1 %535 }
 0x16e   : > { %567 = vst.msk [vmem:[%s1247_s12 + $0x50] sm:$0xff] %vm556_vm3, %v538_v40  ;;  %566 = vst.msk [vmem:[%s1247_s12 + $0x48] sm:$0xff] %vm556_vm3, %v536_v41 }
 0x171   : > { %v524_v42 = vpop.permute.xlu1 %523  ;;  %v526_v43 = vpop.permute.xlu0 %525 }
 0x172   : > { %560 = vst.msk [vmem:[%s1247_s12 + $0x18] sm:$0xff] %vm556_vm3, %v524_v42  ;;  %561 = vst.msk [vmem:[%s1247_s12 + $0x20] sm:$0xff] %vm556_vm3, %v526_v43 }
 0x175   : > { %v528_v44 = vpop.permute.xlu1 %527 }
 0x176   : > { %562 = vst.msk [vmem:[%s1247_s12 + $0x28] sm:$0xff] %vm556_vm3, %v528_v44  ;;  %v530_v45 = vpop.permute.xlu0 %529 }
 0x177   : > { %563 = vst.msk [vmem:[%s1247_s12 + $0x30] sm:$0xff] %vm556_vm3, %v530_v45  ;;  %576 = sbr.rel (!%p1173_p4) target bundleno = 433 (0x1b1), region = 36 }
 0x179   : > { %v540_v46 = vpop.permute.xlu1 %539 }
 0x17a   : > { %568 = vst.msk [vmem:[%s1247_s12 + $0x58] sm:$0xff] %vm556_vm3, %v540_v46  ;;  %v542_v47 = vpop.permute.xlu0 %541 }
 0x17b   : > { %569 = vst.msk [vmem:[%s1247_s12 + $0x60] sm:$0xff] %vm556_vm3, %v542_v47 }
 0x17c   : > { %s1438_s17 = smov (!%p579_p8, %s578_s17), 13 }
 0x17d   : > { %s855_s25 = sshll.u32 %s1438_s17, 7 }
 0x17e   : > { %p858_p9 = scmp.eq.s32.totalorder %s855_s25, 0 }
 0x17f   : > { %1033 = sdivrem.u32 (!%p858_p9), %s1438_s17, 13 }
 0x180   : > { %587 = sbr.rel (%p858_p9) target bundleno = 433 (0x1b1), region = 40 }
 0x188   : > { %s1350_s20 = spop.drf %1033 }
 0x189   : > { %p859_p10 = scmp.le.s32.totalorder %s1350_s20, 0 }
 0x18a   : > { %s1431_s15 = smov (!%p859_p10), %s1344_s24  ;;  %s1432_s23 = smov (!%p859_p10), %s1247_s12 }
 0x18b   : > { %792 = sbr.rel (%p859_p10) target bundleno = 408 (0x198), region = 116  ;;  %s1359_s26 = smov (!%p859_p10), 0  }
 0x18c   : > { %s1361_s27 = smov (!%p859_p10), 0  }
 0x190 LB: >> { %v676_v48 = vld [vmem:[%s1099_s23] sm:$0xff]  ;;  %v678_v49 = vld [vmem:[%s1099_s23 + $0x8] sm:$0xff]  ;;  %v680_v50 = vld [vmem:[%s1099_s23 + $0x10] sm:$0xff]  ;;  %s702_s28 = sadd.s32 1, %s1103_s26  ;;  %s670_s27 = sadd.s32 1, %s1107_s27   ;;  %s1107_s27 = sphi %s1361_s27, %s670_s27   ;;  %s1103_s26 = sphi %s1359_s26, %s1433_s26   ;;  %s1099_s23 = sphi %s1432_s23, %s707_s23   ;;  %s1095_s15 = sphi %s1431_s15, %s708_s15  }
 0x191   : >> { %677 = vst [vmem:[%s1095_s15] sm:$0xff] %v676_v48  ;;  %679 = vst [vmem:[%s1095_s15 + $0x8] sm:$0xff] %v678_v49  ;;  %v682_v51 = vld [vmem:[%s1099_s23 + $0x18] sm:$0xff]  ;;  %v684_v52 = vld [vmem:[%s1099_s23 + $0x20] sm:$0xff]  ;;  %p703_p11 = scmp.ge.s32.totalorder %s702_s28, %s1350_s20  ;;  %p669_p12 = scmp.ge.s32.totalorder %s670_s27, %s1350_s20 }
 0x192   : >> { %681 = vst [vmem:[%s1095_s15 + $0x10] sm:$0xff] %v680_v50  ;;  %v686_v53 = vld [vmem:[%s1099_s23 + $0x28] sm:$0xff]  ;;  %683 = vst [vmem:[%s1095_s15 + $0x18] sm:$0xff] %v682_v51  ;;  %v688_v54 = vld [vmem:[%s1099_s23 + $0x30] sm:$0xff] }
 0x193   : >> { %685 = vst [vmem:[%s1095_s15 + $0x20] sm:$0xff] %v684_v52  ;;  %687 = vst [vmem:[%s1095_s15 + $0x28] sm:$0xff] %v686_v53  ;;  %v690_v55 = vld [vmem:[%s1099_s23 + $0x38] sm:$0xff]  ;;  %v692_v56 = vld [vmem:[%s1099_s23 + $0x40] sm:$0xff]  ;;  %s1440_s28 = smov (%p703_p11, %s702_s28), 0  ;;  %672 = sbr.rel (!%p669_p12) target bundleno = 400 (0x190), region = 122 }
 0x194   : >> { %689 = vst [vmem:[%s1095_s15 + $0x30] sm:$0xff] %v688_v54  ;;  %691 = vst [vmem:[%s1095_s15 + $0x38] sm:$0xff] %v690_v55  ;;  %v694_v57 = vld [vmem:[%s1099_s23 + $0x48] sm:$0xff]  ;;  %v696_v58 = vld [vmem:[%s1099_s23 + $0x50] sm:$0xff]  ;;  %s705_s29 = smul.u32 104, %s1440_s28  ;;  %s1433_s26 = smov %s1440_s28 }
 0x195   : >> { %693 = vst [vmem:[%s1095_s15 + $0x40] sm:$0xff] %v692_v56  ;;  %v698_v59 = vld [vmem:[%s1099_s23 + $0x58] sm:$0xff]  ;;  %695 = vst [vmem:[%s1095_s15 + $0x48] sm:$0xff] %v694_v57  ;;  %v700_v60 = vld [vmem:[%s1099_s23 + $0x60] sm:$0xff] }
 0x196   : >> { %697 = vst [vmem:[%s1095_s15 + $0x50] sm:$0xff] %v696_v58  ;;  %699 = vst [vmem:[%s1095_s15 + $0x58] sm:$0xff] %v698_v59  ;;  %s707_s23 = scalar_lea.vmem %s1247_s12, %s705_s29 [#allocation2]  }
 0x197   : >> { %701 = vst [vmem:[%s1095_s15 + $0x60] sm:$0xff] %v700_v60  ;;  %s708_s15 = scalar_lea.vmem %s1344_s24, %s705_s29  }
 0x198 PF: > { %1035 = sdivrem.u32 %s1438_s17, 13 }
 0x199   : > { %s860_s30 = smul.u32 104, %s1350_s20 }
 0x19b   : > { %s713_s4 = scalar_lea.vmem %s1247_s12, %s860_s30 [#allocation2]   ;;  %s715_s5 = scalar_lea.vmem %s1344_s24, %s860_s30  }
 0x1a1   : > { %s1036_s6 = spop.drf %1035 }
 0x1a2   : > { %p862_p13 = scmp.le.s32.totalorder %s1036_s6, 0 }
 0x1a3   : > { %s1109_s7 = smov (!%p862_p13), %s715_s5   ;;  %s1113_s8 = smov (!%p862_p13), %s713_s4  }
 0x1a4   : > { %806 = sbr.rel (%p862_p13) target bundleno = 433 (0x1b1), region = 127  ;;  %s1117_s9 = smov (!%p862_p13), 0  }
 0x1a5   : > { %s1121_s10 = smov (!%p862_p13), 0  }
 0x1a9 LB: >> { %v725_v61 = vld [vmem:[%s1115_s8] sm:$0xff]  ;;  %s727_s11 = sadd.s32 1, %s1119_s9  ;;  %s719_s10 = sadd.s32 1, %s1123_s10   ;;  %s1123_s10 = sphi %s1121_s10, %s719_s10   ;;  %s1119_s9 = sphi %s1117_s9, %s1118_s9   ;;  %s1115_s8 = sphi %s1113_s8, %s732_s8   ;;  %s1111_s7 = sphi %s1109_s7, %s733_s7  }
 0x1aa   : >> { %726 = vst [vmem:[%s1111_s7] sm:$0xff] %v725_v61  ;;  %p728_p0 = scmp.ge.s32.totalorder %s727_s11, %s1036_s6  ;;  %p718_p1 = scmp.ge.s32.totalorder %s719_s10, %s1036_s6 }
 0x1ac   : >> { %s1442_s11 = smov (%p728_p0, %s727_s11), 0  ;;  %721 = sbr.rel (!%p718_p1) target bundleno = 425 (0x1a9), region = 133 }
 0x1ad   : >> { %s863_s12 = sshll.u32 %s1442_s11, 3  ;;  %s1118_s9 = smov %s1442_s11  }
 0x1ae   : >> { %s732_s8 = scalar_lea.vmem %s713_s4, %s863_s12 [#allocation2]   ;;  %s733_s7 = scalar_lea.vmem %s715_s5, %s863_s12  }
 0x1b1 PF: > { %p10_p2 = scmp.ge.s32.totalorder %s1163_s16, 6   ;;  %s1434_s12 = smov %s1087_s13 }
 0x1b2   : > { %s1435_s13 = smov %s1171_s19  ;;  %s1436_s14 = smov %s1163_s16 }
 0x1b3   :  { %12 = sbr.rel (!%p10_p2) target bundleno = 2 (0x2), region = 144 }

</bundles_post_ra>
